<compile_context>
chip_gen: v6e
topology: v6e:2x2x1
jax: 0.10.0
libtpu: 0.0.40
codegen_flags: <defaults>
</compile_context>

<pallas_src>
import functools

import jax
import jax.numpy as jnp
from jax.experimental import pallas as pl
from jax.experimental.pallas import tpu as pltpu


def _round_up(x, m):
    return ((x + m - 1) // m) * m


def _conv_stats_kernel(p_ref, w_ref, sum_ref, sq_ref):
    # p_ref: (K, Pt) bf16 patches, w_ref: (Cout, K) bf16 weight.
    conv = jnp.dot(w_ref[...], p_ref[...],
                   preferred_element_type=jnp.float32)            # (Cout, Pt) f32
    # One sweep: per-channel partial sum and sum-of-squares for this tile.
    sum_ref[...] = jnp.sum(conv, axis=1, keepdims=True)[None]     # (1, Cout, 1)
    sq_ref[...] = jnp.sum(conv * conv, axis=1, keepdims=True)[None]


def _conv_bn_lrelu_kernel(p_ref, w_ref, scale_ref, shift_ref, o_ref, *, slope):
    # Recompute the cheap matmul, then fused BN affine + LeakyReLU.
    conv = jnp.dot(w_ref[...], p_ref[...],
                   preferred_element_type=jnp.float32)            # (Cout, Pt) f32
    y = conv * scale_ref[...] + shift_ref[...]                    # (Cout,1) bcast over lanes
    o_ref[...] = jnp.where(y > 0, y, slope * y)


def conv_bn_lrelu(x_nchw, weight, gamma, beta, *, stride=2, eps=1e-5,
                  negative_slope=0.1, p_tile=1024):
    """x_nchw: (N, Cin, H, W); weight: (Cout, Cin, KH, KW); gamma/beta: (Cout,)."""
    N, Cin, H, W = x_nchw.shape
    Cout, _, KH, KW = weight.shape
    Ho = (H - KH) // stride + 1
    Wo = (W - KW) // stride + 1
    P = N * Ho * Wo
    K = Cin * KH * KW

    # --- im2col in lane-dense (K, P) layout (glue, plain JAX) ---
    # TODO(synk): fuse the 9-tap window extraction into the kernel (per-(kh,kw) strided
    # reads summed into the f32 accumulator) to avoid the HBM patch-matrix round trip.
    slices = []
    for kh in range(KH):
        for kw in range(KW):
            slices.append(
                x_nchw[:, :, kh:kh + stride * (Ho - 1) + 1:stride,
                             kw:kw + stride * (Wo - 1) + 1:stride])  # (N, Cin, Ho, Wo)
    patches = jnp.stack(slices, axis=0)                 # (KH*KW, N, Cin, Ho, Wo)
    patches = jnp.transpose(patches, (2, 0, 1, 3, 4))   # (Cin, KH*KW, N, Ho, Wo)
    patches = patches.reshape(K, P)                     # rows: cin-major,kh,kw; cols: n,ho,wo

    # Tile over P (lane axis); keep tiles a multiple of 128 and small enough for v7x VMEM.
    pt = min(p_tile, _round_up(P, 128))
    P_pad = _round_up(P, pt)
    if P_pad != P:
        patches = jnp.pad(patches, ((0, 0), (0, P_pad - P)))
    patches = patches.astype(jnp.bfloat16)

    w_mat = weight.reshape(Cout, K).astype(jnp.bfloat16)   # (Cout, Cin*KH*KW)

    n_tiles = P_pad // pt

    # ---- Pass 1: per-tile partial per-channel sum / sum-of-squares of the conv ----
    sums, sqs = pl.pallas_call(
        _conv_stats_kernel,
        out_shape=(jax.ShapeDtypeStruct((n_tiles, Cout, 1), jnp.float32),
                   jax.ShapeDtypeStruct((n_tiles, Cout, 1), jnp.float32)),
        grid=(n_tiles,),
        in_specs=[
            pl.BlockSpec((K, pt), lambda i: (0, i)),
            pl.BlockSpec((Cout, K), lambda i: (0, 0)),
        ],
        out_specs=(pl.BlockSpec((1, Cout, 1), lambda i: (i, 0, 0)),
                   pl.BlockSpec((1, Cout, 1), lambda i: (i, 0, 0))),
        compiler_params=pltpu.CompilerParams(dimension_semantics=("parallel",)),
    )(patches, w_mat)

    # ---- Tiny cross-tile reduction + BN affine folding in plain JAX (f32) ----
    total = jnp.float32(P)                                  # TRUE element count (not padded)
    mean = jnp.sum(sums, axis=0) / total                    # (Cout, 1)
    var = jnp.maximum(jnp.sum(sqs, axis=0) / total - mean * mean, 0.0)
    inv_std = jax.lax.rsqrt(var + eps)
    scale = gamma.reshape(Cout, 1).astype(jnp.float32) * inv_std
    shift = beta.reshape(Cout, 1).astype(jnp.float32) - mean * scale

    # ---- Pass 2: conv (recomputed) + fused BN affine + LeakyReLU, lane-dense output ----
    out_flat = pl.pallas_call(
        functools.partial(_conv_bn_lrelu_kernel, slope=negative_slope),
        out_shape=jax.ShapeDtypeStruct((Cout, P_pad), jnp.float32),
        grid=(n_tiles,),
        in_specs=[
            pl.BlockSpec((K, pt), lambda i: (0, i)),
            pl.BlockSpec((Cout, K), lambda i: (0, 0)),
            pl.BlockSpec((Cout, 1), lambda i: (0, 0)),
            pl.BlockSpec((Cout, 1), lambda i: (0, 0)),
        ],
        out_specs=pl.BlockSpec((Cout, pt), lambda i: (0, i)),
        compiler_params=pltpu.CompilerParams(dimension_semantics=("parallel",)),
    )(patches, w_mat, scale, shift)

    # (Cout, P_pad) -> drop padding -> (N, Cout, Ho, Wo)
    out = out_flat[:, :P].reshape(Cout, N, Ho, Wo)
    return jnp.transpose(out, (1, 0, 2, 3))


if __name__ == "__main__":
    key = jax.random.PRNGKey(0)
    k_x, k_w, k_g, k_b = jax.random.split(key, 4)

    # Small shapes consistent with the module: Conv2d expects Cin=3, Cout=16, k=3, s=2.
    N, Cin, H, W = 2, 3, 16, 16
    Cout, KH, KW = 16, 3, 3

    x = jax.random.normal(k_x, (N, Cin, H, W), dtype=jnp.float32)
    weight = 0.1 * jax.random.normal(k_w, (Cout, Cin, KH, KW), dtype=jnp.float32)
    gamma = 1.0 + 0.05 * jax.random.normal(k_g, (Cout,), dtype=jnp.float32)
    beta = 0.05 * jax.random.normal(k_b, (Cout,), dtype=jnp.float32)

    out = conv_bn_lrelu(x, weight, gamma, beta, stride=2)
    out = jax.block_until_ready(out)
    assert out.shape == (N, Cout, 7, 7), out.shape
    assert bool(jnp.all(jnp.isfinite(out)))
    print("KERNEL_OK")
</pallas_src>

<mosaic_0001>
module attributes {stable_mosaic.version = 11 : i64} {
  func.func @_conv_stats_kernel(%arg0: i32, %arg1: memref<27x128xbf16, #tpu.memory_space<vmem>>, %arg2: memref<16x27xbf16, #tpu.memory_space<vmem>>, %arg3: memref<1x16x1xf32, #tpu.memory_space<vmem>>, %arg4: memref<1x16x1xf32, #tpu.memory_space<vmem>>) attributes {dimension_semantics = [#tpu.dimension_semantics<parallel>], iteration_bounds = array<i64: 1>, scalar_prefetch = 0 : i64, scratch_operands = 0 : i64, tpu.core_type = #tpu.core_type<tc>, window_params = [{transform_indices = @transform_0, window_bounds = array<i64: 27, 128>}, {pipeline_mode = #tpu.pipeline_mode<synchronous>, transform_indices = @transform_1, window_bounds = array<i64: 16, 27>}, {transform_indices = @transform_2, window_bounds = array<i64: 1, 16, 1>}, {transform_indices = @transform_3, window_bounds = array<i64: 1, 16, 1>}]} {
    %c0 = arith.constant 0 : index
    %c0_0 = arith.constant 0 : index
    %0 = vector.load %arg2[%c0, %c0_0] : memref<16x27xbf16, #tpu.memory_space<vmem>>, vector<16x27xbf16>
    %c0_1 = arith.constant 0 : index
    %c0_2 = arith.constant 0 : index
    %1 = vector.load %arg1[%c0_1, %c0_2] : memref<27x128xbf16, #tpu.memory_space<vmem>>, vector<27x128xbf16>
    %cst = arith.constant dense<0.000000e+00> : vector<16x128xf32>
    %2 = tpu.matmul %0, %1, %cst {dimension_numbers = #tpu.dot_dimension_numbers<[1], [0], [0], [1], [0, 0, 1, 1], [], []>} : vector<16x27xbf16>, vector<27x128xbf16>, vector<16x128xf32> -> vector<16x128xf32>
    %cst_3 = arith.constant dense<0.000000e+00> : vector<16xf32>
    %3 = vector.multi_reduction <add>, %2, %cst_3 [1] : vector<16x128xf32> to vector<16xf32>
    %4 = vector.shape_cast %3 : vector<16xf32> to vector<16x1xf32>
    %5 = vector.shape_cast %4 : vector<16x1xf32> to vector<1x16x1xf32>
    %c0_4 = arith.constant 0 : index
    %c0_5 = arith.constant 0 : index
    %c0_6 = arith.constant 0 : index
    %6 = vector.load %arg3[%c0_4, %c0_5, %c0_6] : memref<1x16x1xf32, #tpu.memory_space<vmem>>, vector<1x16x1xf32>
    tpu.vector_store %arg3[%c0_4, %c0_5, %c0_6], %5 {strides = array<i32>} : memref<1x16x1xf32, #tpu.memory_space<vmem>>, vector<1x16x1xf32>,
    %7 = arith.mulf %2, %2 : vector<16x128xf32>
    %cst_7 = arith.constant dense<0.000000e+00> : vector<16xf32>
    %8 = vector.multi_reduction <add>, %7, %cst_7 [1] : vector<16x128xf32> to vector<16xf32>
    %9 = vector.shape_cast %8 : vector<16xf32> to vector<16x1xf32>
    %10 = vector.shape_cast %9 : vector<16x1xf32> to vector<1x16x1xf32>
    %c0_8 = arith.constant 0 : index
    %c0_9 = arith.constant 0 : index
    %c0_10 = arith.constant 0 : index
    %11 = vector.load %arg4[%c0_8, %c0_9, %c0_10] : memref<1x16x1xf32, #tpu.memory_space<vmem>>, vector<1x16x1xf32>
    tpu.vector_store %arg4[%c0_8, %c0_9, %c0_10], %10 {strides = array<i32>} : memref<1x16x1xf32, #tpu.memory_space<vmem>>, vector<1x16x1xf32>,
    return
  }
  func.func @transform_0(%arg0: i32) -> (i32, i32) {
    %c0_i32 = arith.constant 0 : i32
    %c0_i32_0 = arith.constant 0 : i32
    return %c0_i32, %arg0 : i32, i32
  }
  func.func @transform_1(%arg0: i32) -> (i32, i32) {
    %c0_i32 = arith.constant 0 : i32
    %c0_i32_0 = arith.constant 0 : i32
    %c0_i32_1 = arith.constant 0 : i32
    return %c0_i32, %c0_i32_0 : i32, i32
  }
  func.func @transform_2(%arg0: i32) -> (i32, i32, i32) {
    %c0_i32 = arith.constant 0 : i32
    %c0_i32_0 = arith.constant 0 : i32
    %c0_i32_1 = arith.constant 0 : i32
    return %arg0, %c0_i32, %c0_i32_0 : i32, i32, i32
  }
  func.func @transform_3(%arg0: i32) -> (i32, i32, i32) {
    %c0_i32 = arith.constant 0 : i32
    %c0_i32_0 = arith.constant 0 : i32
    %c0_i32_1 = arith.constant 0 : i32
    return %arg0, %c0_i32, %c0_i32_0 : i32, i32, i32
  }
}

</mosaic_0001>

<bundles_post_ra>
// kernel: tpu_custom_call.1
= control target key start
LH: loop header
LB: loop body
LE: loop exit
PB: predicated region body
PF: predicated region fallthrough
CT: control target
= control target key end

     0   :  { %9 = vsyncpa [#allocation3], 0  ;;  %s255_s0 = inlined_call_operand.hbm [shape: bf16[27,128], index: 0, kind: input, shape index: {}]   ;;  %s256_s1 = inlined_call_operand.hbm [shape: bf16[16,27], index: 1, kind: input, shape index: {}]   ;;  %s257_s2 = inlined_call_operand.vmem [shape: f32[1,16,1], index: 2, kind: output, shape index: {0}]   ;;  %s258_s3 = inlined_call_operand.vmem [shape: f32[1,16,1], index: 3, kind: output, shape index: {1}]  }
   0x1   :  { %10 = vsyncpa [#allocation5], 0  ;;  %s210_s12 = smov [#allocation2]  }
   0x2   :  { %s16_s13 = sshll.u32 %s210_s12, 4  ;;  %s17_s13 = int_to_ptr.vmem [resolvable:$true] %s16_s13 }
   0x3   :  { %s174_s14 = scalar_lea.vmem %s17_s13, 256  ;;  %p179_p1 = scmp.lt.s32.totalorder %s17_s13, %s17_s13 }
   0x4   :  { %p175_p0 = scmp.ne.s32.totalorder %s17_s13, %s174_s14  ;;  %p180_p2 = scmp.lt.s32.totalorder %s174_s14, %s174_s14 }
   0x6   :  { %p181_p3 = por %p180_p2, %p179_p1 }
   0x8   :  { %p182_p4 = pnand %p181_p3, %p175_p0 }
   0xa   :  { %185 = shalt.err (!%p182_p4)
}
   0xb   :  { %s211_s15 = smov 64   ;;  %s212_s16 = smov 4  }
   0xc   :  { %22 = dma.hbm_to_vmem [thread:$0]  %s255_s0, 256, %s17_s13, [#allocation3], %s211_s15, %s211_s15, %s212_s16  }
   0xd   :  { %s213_s19 = smov [#allocation4]  }
   0xe   :  { %s28_s20 = sshll.u32 %s213_s19, 4  ;;  %s29_s20 = int_to_ptr.vmem [resolvable:$true] %s28_s20 }
   0xf   :  { %s194_s21 = scalar_lea.vmem %s29_s20, 128  ;;  %p199_p6 = scmp.lt.s32.totalorder %s29_s20, %s29_s20 }
  0x10   :  { %p195_p5 = scmp.ne.s32.totalorder %s29_s20, %s194_s21  ;;  %p200_p7 = scmp.lt.s32.totalorder %s194_s21, %s194_s21 }
  0x12   :  { %p201_p8 = por %p200_p7, %p199_p6 }
  0x14   :  { %p202_p9 = pnand %p201_p8, %p195_p5 }
  0x16   :  { %205 = shalt.err (!%p202_p9)
}
  0x17   :  { %34 = dma.hbm_to_vmem [thread:$0]  %s256_s1, 128, %s29_s20, [#allocation5], %s211_s15, %s211_s15, %s212_s16  }
  0x18   :  { %206 = dma.done.wait [#allocation3], 256  }
  0x19   :  { %207 = vsyncadd [#allocation3], 4294967040 }
  0x1a   :  { %208 = dma.done.wait [#allocation5], 128  }
  0x1b   :  { %209 = vsyncadd [#allocation5], 4294967168  ;;  %vm68_vm0 = vcmask 1044480   ;;  %v214_v0 = vmov 0.0   ;;  %vm215_vm1 = vmmov 0   ;;  %vm69_vm2 = vcmask 1045504  }
  0x1c   :  { %148 = vmatprep.subr.bf16.mxu0 %v214_v0  ;;  %152 = vmatprep.mubr.msk.bf16.mxu0 %vm215_vm1, %v214_v0  ;;  %v216_v1 = vmov 65535   ;;  %v163_v4 = vld [vmem:[#allocation2 + $0x8] sm:$0x3f]   ;;  %v164_v6 = vld [vmem:[#allocation2] sm:$0xff]   ;;  %v165_v7 = vld [vmem:[#allocation4] sm:$0xff]   ;;  %vm64_vm3 = vcmask 220160  }
  0x1d   :  { %v70_v2 = vsel %vm68_vm0, 4294967295, %v216_v1  ;;  %vm120_vm4 = vcmask 7168  }
  0x1e   :  { %v71_v3 = vsel %vm69_vm2, %v70_v2, 0 }
  0x1f   :  { %v73_v5 = vand.u32 %v163_v4, %v71_v3 }
  0x21   :  { %149 = vmatpush3.bf16.msra.mxu0 %v73_v5 }
  0x22   :  { %150 = vmatprep.subr.bf16.mxu0 %v214_v0 }
  0x25   :  { %151 = vmatpush3.bf16.msra.mxu0 %v164_v6 }
  0x28   :  { %153 = vmatmul.mubr.msk.bf16.vlgmr.msra.gmra.mxu0 %vm64_vm3, %v165_v7 }
  0xe8   :  { %v109_v8 = vpop.f32.mrf.mxu0 }
  0xe9   :  { %116 = vadd.xlane.f32.xlu0 %v109_v8  ;;  %v123_v9 = vmul.f32 %v109_v8, %v109_v8 }
  0xea   :  { %v154_v10 = vpop.f32.mrf.mxu0 }
  0xeb   :  { %125 = vadd.xlane.f32.xlu1 %v123_v9 }
  0xec   :  { %v112_v11 = vpop.f32.mrf.mxu0 }
  0xed   :  { %118 = vadd.xlane.f32.xlu0 %v112_v11  ;;  %v124_v12 = vmul.f32 %v112_v11, %v112_v11 }
  0xee   :  { %v155_v13 = vpop.f32.mrf.mxu0 }
  0xef   :  { %127 = vadd.xlane.f32.xlu1 %v124_v12 }
 0x172   :  { %v117_v14 = vpop.xlane.xlu0 %116 }
 0x173   :  { %121 = vst.msk [vmem:[%s257_s2] sm:$0xff] %vm120_vm4, %v117_v14 }
 0x174   :  { %v126_v15 = vpop.xlane.xlu1 %125 }
 0x175   :  { %129 = vst.msk [vmem:[%s258_s3] sm:$0xff] %vm120_vm4, %v126_v15 }
 0x176   :  { %v119_v16 = vpop.xlane.xlu0 %118 }
 0x177   :  { %122 = vst.msk [vmem:[%s257_s2 + $0x8] sm:$0xff] %vm120_vm4, %v119_v16 }
 0x178   :  { %v128_v17 = vpop.xlane.xlu1 %127 }
 0x179   :  { %130 = vst.msk [vmem:[%s258_s3 + $0x8] sm:$0xff] %vm120_vm4, %v128_v17 }
 0x17a   :  { %139 = vsyncpa [#allocation3], 1 }
 0x17b   :  { %140 = vsyncpa [#allocation5], 1 }

</bundles_post_ra>
